<compile_context>
chip_gen: v7x
topology: tpu7x:2x2x1
jax: 0.10.0
libtpu: 0.0.40
codegen_flags: <defaults>
</compile_context>

<pallas_src>
import math

import jax
import jax.numpy as jnp
from jax.experimental import pallas as pl
from jax.experimental.pallas import tpu as pltpu

_LANE = 128
_TARGET_BLOCK_BYTES = 4 * 1024 * 1024      # ~4 MiB per block buffer
_MIN_GRID_STEPS = 4                        # pipelining + v7x megacore sharding
_VMEM_LIMIT_BYTES = 40 * 1024 * 1024       # 4 dbl-buffered 4 MiB tiles + headroom
_MIN_PALLAS_BYTES = 256 * 1024             # below this, plain XLA is cheaper


def _temperature_scale_kernel(temp_ref, x_ref, o_ref):
    # temp_ref: (1, 1) f32 in SMEM; x_ref / o_ref: (tile_rows, cols) in VMEM.
    inv = (1.0 / temp_ref[0, 0]).astype(x_ref.dtype)   # scalar recip, once per step
    o_ref[...] = (x_ref[...] * inv).astype(o_ref.dtype)  # one vmul per vreg


def _sublane_multiple(dtype) -> int:
    # f32 -> 8, bf16 -> 16, int8/fp8 -> 32 (sublane packing).
    itemsize = jnp.dtype(dtype).itemsize
    return max(8, 32 // itemsize)


def temperature_scale(logits: jax.Array,
                      temperature: jax.Array,
                      *,
                      donate_logits: bool = False,
                      min_pallas_bytes: int = _MIN_PALLAS_BYTES) -> jax.Array:
    """logits: any-shape float array; temperature: shape (1,) float parameter."""
    orig_shape = logits.shape
    dtype = logits.dtype
    itemsize = jnp.dtype(dtype).itemsize
    n = math.prod(orig_shape) if orig_shape else 1
    total_bytes = n * itemsize

    t_f32 = jnp.asarray(temperature, dtype=jnp.float32).reshape(1, 1)

    # --- small-size bailout: fixed pallas_call overhead dominates tiny inputs;
    #     plain XLA will also fuse the scale into the consumer for free. -------
    if n == 0 or total_bytes < min_pallas_bytes:
        inv = (1.0 / t_f32[0, 0]).astype(dtype)
        return (logits * inv).astype(dtype)

    # --- 2D view without any pad/slice pass ----------------------------------
    if n % _LANE == 0:
        rows, cols = n // _LANE, _LANE            # lane-dense: unmasked vst
    else:
        cols = orig_shape[-1] if logits.ndim >= 2 else n
        rows = n // cols                          # full-extent last dim: legal
    x2d = logits.reshape(rows, cols)              # block; masked vst for tail

    # --- tile the row axis ----------------------------------------------------
    mult = _sublane_multiple(dtype)
    bytes_per_row = max(cols * itemsize, 1)
    target_rows = max(mult, _TARGET_BLOCK_BYTES // bytes_per_row)
    target_rows = max(mult, (target_rows // mult) * mult)
    # Guarantee several grid steps when there's enough data: pipelining on all
    # generations + lets "parallel" shard across v7x's two TensorCores.
    if rows >= _MIN_GRID_STEPS * mult:
        cap = (pl.cdiv(rows, _MIN_GRID_STEPS) // mult) * mult
        target_rows = min(target_rows, max(mult, cap))
    tile_rows = rows if rows <= target_rows else target_rows   # mult of sublane
    grid = (pl.cdiv(rows, tile_rows),)            # ragged tail handled by Pallas

    out2d = pl.pallas_call(
        _temperature_scale_kernel,
        out_shape=jax.ShapeDtypeStruct((rows, cols), dtype),
        grid_spec=pltpu.PrefetchScalarGridSpec(
            num_scalar_prefetch=0,
            grid=grid,
            in_specs=[
                pl.BlockSpec(memory_space=pltpu.MemorySpace.SMEM),   # temperature
                pl.BlockSpec((tile_rows, cols), lambda i: (i, 0)),   # logits tile
            ],
            out_specs=pl.BlockSpec((tile_rows, cols), lambda i: (i, 0)),
        ),
        compiler_params=pltpu.CompilerParams(
            dimension_semantics=("parallel",),
            vmem_limit_bytes=_VMEM_LIMIT_BYTES,
        ),
        cost_estimate=pl.CostEstimate(
            flops=n, transcendentals=0, bytes_accessed=2 * total_bytes + 4),
        input_output_aliases=({1: 0} if donate_logits else {}),
    )(t_f32, x2d)

    return out2d.reshape(orig_shape)


if __name__ == "__main__":
    key = jax.random.PRNGKey(0)
    k0, k1, k2, k3 = jax.random.split(key, 4)

    # nn.Parameter(torch.ones(1) * 1.0) analogue; non-trivial value so the
    # scaling is actually exercised.
    temperature = jnp.ones((1,), dtype=jnp.float32) * 1.5

    # 1) Tiny [batch, num_classes] logits -> small-size bailout (plain XLA).
    x_small = jax.random.normal(k0, (8, 32), dtype=jnp.float32)
    out_small = jax.block_until_ready(temperature_scale(x_small, temperature))
    assert jnp.allclose(out_small, x_small / 1.5, rtol=1e-5, atol=1e-6), \
        "small f32 mismatch vs reference"

    # 2) Lane-dense f32 (1 MiB): pallas path, [2048,128] view, grid of 4.
    x_med = jax.random.normal(k1, (256, 1024), dtype=jnp.float32)
    out_med = jax.block_until_ready(temperature_scale(x_med, temperature))
    assert jnp.allclose(out_med, x_med / 1.5, rtol=1e-5, atol=1e-6), \
        "medium f32 mismatch vs reference"

    # 3) Ragged last dim f32 (forced through pallas): full-extent C=100 block,
    #    masked partial stores, ragged final row tile.
    x_rag = jax.random.normal(k2, (63, 100), dtype=jnp.float32)
    out_rag = jax.block_until_ready(
        temperature_scale(x_rag, temperature, min_pallas_bytes=0))
    assert jnp.allclose(out_rag, x_rag / 1.5, rtol=1e-5, atol=1e-6), \
        "ragged f32 mismatch vs reference"

    # 4) bf16, 3-D logits (forced through pallas): native-dtype multiply.
    x_bf = jax.random.normal(k3, (2, 24, 100), dtype=jnp.bfloat16)
    out_bf = jax.block_until_ready(
        temperature_scale(x_bf, temperature, min_pallas_bytes=0))
    ref_bf = (x_bf.astype(jnp.float32) / 1.5).astype(jnp.bfloat16)
    assert jnp.allclose(out_bf.astype(jnp.float32), ref_bf.astype(jnp.float32),
                        rtol=2e-2, atol=2e-2), "bf16 mismatch vs reference"

    print("KERNEL_OK")
</pallas_src>

<mosaic_0001>
module attributes {stable_mosaic.version = 11 : i64} {
  func.func @_temperature_scale_kernel(%arg0: i32, %arg1: memref<1x1xf32, #tpu.memory_space<smem>>, %arg2: memref<512x128xf32, #tpu.memory_space<vmem>>, %arg3: memref<512x128xf32, #tpu.memory_space<vmem>>) attributes {dimension_semantics = [#tpu.dimension_semantics<parallel>], iteration_bounds = array<i64: 4>, scalar_prefetch = 0 : i64, scratch_operands = 0 : i64, tpu.core_type = #tpu.core_type<tc>, window_params = [{transform_indices = @transform_0, window_bounds = array<i64: 1, 1>}, {transform_indices = @transform_1, window_bounds = array<i64: 512, 128>}, {transform_indices = @transform_2, window_bounds = array<i64: 512, 128>}]} {
    %c0 = arith.constant 0 : index
    %c0_0 = arith.constant 0 : index
    %0 = memref.load %arg1[%c0, %c0_0] : memref<1x1xf32, #tpu.memory_space<smem>>
    %cst = arith.constant 1.000000e+00 : f32
    %1 = arith.divf %cst, %0 : f32
    %c0_1 = arith.constant 0 : index
    %c0_2 = arith.constant 0 : index
    %2 = vector.load %arg2[%c0_1, %c0_2] : memref<512x128xf32, #tpu.memory_space<vmem>>, vector<512x128xf32>
    %3 = vector.broadcast %1 : f32 to vector<512x128xf32>
    %4 = arith.mulf %2, %3 : vector<512x128xf32>
    %c0_3 = arith.constant 0 : index
    %c0_4 = arith.constant 0 : index
    %5 = vector.load %arg3[%c0_3, %c0_4] : memref<512x128xf32, #tpu.memory_space<vmem>>, vector<512x128xf32>
    tpu.vector_store %arg3[%c0_3, %c0_4], %4 {strides = array<i32>} : memref<512x128xf32, #tpu.memory_space<vmem>>, vector<512x128xf32>,
    return
  }
  func.func @transform_0(%arg0: i32) -> (i32, i32) {
    %c0_i32 = arith.constant 0 : i32
    %c0_i32_0 = arith.constant 0 : i32
    %c0_i32_1 = arith.constant 0 : i32
    return %c0_i32, %c0_i32_0 : i32, i32
  }
  func.func @transform_1(%arg0: i32) -> (i32, i32) {
    %c0_i32 = arith.constant 0 : i32
    %c0_i32_0 = arith.constant 0 : i32
    return %arg0, %c0_i32 : i32, i32
  }
  func.func @transform_2(%arg0: i32) -> (i32, i32) {
    %c0_i32 = arith.constant 0 : i32
    %c0_i32_0 = arith.constant 0 : i32
    return %arg0, %c0_i32 : i32, i32
  }
}

</mosaic_0001>

<bundles_post_ra>
// kernel: tpu_custom_call.1
= control target key start
LH: loop header
LB: loop body
LE: loop exit
PB: predicated region body
PF: predicated region fallthrough
CT: control target
= control target key end

     0   :  { %s1008_s0 = inlined_call_operand.<no memory space> [shape: f32[1,1], index: 0, kind: input, shape index: {}]   ;;  %s1009_s1 = inlined_call_operand.hbm [shape: f32[2048,128], index: 1, kind: input, shape index: {}]   ;;  %s1010_s2 = inlined_call_operand.hbm [shape: f32[2048,128], index: 2, kind: output, shape index: {}]  }
   0x1   :  { %7 = sst [smem:[#allocation2]] %s1008_s0 }
   0x2   :  { %8 = vsyncpa [#allocation4], 0 }
   0x3   :  { %10 = vsyncpa [#allocation4 + $0x1], 0 }
   0x4   :  { %11 = vsyncpa [#allocation5], 0 }
   0x5   :  { %13 = vsyncpa [#allocation5 + $0x1], 0  ;;  %s641_s11 = smov 0   ;;  %s643_s12 = smov 0  }
   0x6   :  { %s645_s13 = smov 0   ;;  %s647_s14 = smov 0  }
   0x7 LB: > { %s662_s0 = sadd.s32 4294967295, %s615_s14   ;;  %s449_s15 = sadd.s32 4294967294, %s615_s14   ;;  %s615_s14 = sphi %s647_s14, %s1022_s14   ;;  %s611_s13 = sphi %s645_s13, %s1021_s13   ;;  %s607_s12 = sphi %s643_s12, %s1020_s12   ;;  %s603_s11 = sphi %s641_s11, %s1019_s11  }
   0x8   : > { %s666_s16 = sadd.s32 1, %s615_s14   ;;  %s47_s17 = sadd.s32 1, %s611_s13 }
   0x9   : > { %s44_s18 = ssub.s32 %s615_s14, %s666_s16  ;;  %p54_p0 = scmp.ne.s32.totalorder %s611_s13, %s607_s12 }
   0xa   : > { %p45_p1 = scmp.eq.s32.totalorder %s44_s18, 0  ;;  %p55_p2 = scmp.eq.s32.totalorder %s615_s14, 0 }
   0xb   : > { %p60_p3 = scmp.ne.s32.totalorder %s607_s12, %s603_s11  ;;  %p61_p4 = scmp.eq.s32.totalorder %s662_s0, 0 }
   0xc   : > { %s678_s19 = scalar_select %p45_p1, %s611_s13, %s47_s17  }
   0xd   : > { %p680_p5 = por %p55_p2, %p54_p0  ;;  %p684_p6 = por %p61_p4, %p60_p3 }
   0xe   : > { %p84_p7 = scmp.eq.s32.totalorder %s662_s0, 3  ;;  %p90_p8 = scmp.eq.s32.totalorder %s449_s15, 3 }
   0xf   : > { %p479_p9 = scmp.lt.s32.totalorder %s615_s14, 4  ;;  %s113_s24 = sand.u32 1, %s611_s13  }
  0x10   : > { %p690_p10 = por %p84_p7, %p54_p0  ;;  %p694_p11 = por %p90_p8, %p60_p3 }
  0x11   : > { %s463_s25 = sshll.u32 %s615_s14, 13  ;;  %s452_s26 = sshll.u32 %s113_s24, 9 }
  0x12   : > { %s1014_s22 = scalar_select %p690_p10, 1, 0 }
  0x13   : > { %s1015_s23 = scalar_select %p694_p11, 1, 0 }
  0x14   : > { %s703_s29 = scalar_lea.hbm %s1009_s1, %s463_s25  ;;  %s117_s30 = scalar_lea.vmem [#allocation3], %s452_s26 }
  0x15   : > { %s124_s3 = sshll.u32 %s117_s30, 4  ;;  %p707_p12 = pnand %p479_p9, %p680_p5  ;;  %s711_s3 = int_to_ptr.vmem [resolvable:$true] %s124_s3 }
  0x16   : > { %s713_s5 = scalar_lea.sflag [#allocation4], %s113_s24  ;;  %s519_s6 = scalar_lea.hbm %s703_s29, 8192 }
  0x17   : > { %p520_p13 = scmp.ne.s32.totalorder %s703_s29, %s519_s6  ;;  %p521_p0 = pneg %p707_p12 }
  0x18   : > { %s524_s9 = scalar_lea.hbm %s1009_s1, 32768  ;;  %p525_p3 = scmp.lt.u32.totalorder %s703_s29, %s1009_s1 }
  0x19   : > { %p522_p1 = pnand %p521_p0, %p520_p13  ;;  %p526_p4 = scmp.lt.u32.totalorder %s524_s9, %s519_s6 }
  0x1a   : > { %p528_p7 = scmp.lt.u32.totalorder %s519_s6, %s703_s29 }
  0x1b   : > { %p523_p2 = pneg %p522_p1  ;;  %p527_p5 = por %p526_p4, %p525_p3 }
  0x1d   : > { %p529_p8 = por %p528_p7, %p527_p5 }
  0x1f   : > { %p530_p9 = pnand %p529_p8, %p523_p2 }
  0x21   : > { %533 = shalt.err (!%p530_p9)
}
  0x22   : > { %s534_s17 = scalar_lea.vmem %s711_s3, 8192  ;;  %s617_s18 = smov [#allocation3]  }
  0x23   : > { %p535_p13 = scmp.ne.s32.totalorder %s711_s3, %s534_s17  ;;  %s539_s20 = sshll.u32 %s617_s18, 4  ;;  %s540_s20 = int_to_ptr.vmem [resolvable:$false] %s539_s20 }
  0x24   : > { %s541_s24 = scalar_lea.vmem %s540_s20, 16384  ;;  %p542_p10 = scmp.lt.s32.totalorder %s711_s3, %s540_s20 }
  0x25   : > { %p537_p1 = pnand %p535_p13, %p521_p0  ;;  %p543_p3 = scmp.lt.s32.totalorder %s541_s24, %s534_s17 }
  0x27   : > { %p538_p11 = pneg %p537_p1  ;;  %p544_p4 = por %p543_p3, %p542_p10 }
  0x29   : > { %p545_p5 = pnand %p544_p4, %p538_p11 }
  0x2b   : > { %548 = shalt.err (!%p545_p5)
}
  0x2c   : > { %s618_s25 = smov 128   ;;  %s619_s26 = smov 8  }
  0x2d   : > { %474 = dma.hbm_to_vmem [thread:$0]  (!%p707_p12), %s703_s29, 8192, %s711_s3, %s713_s5, %s618_s25, %s618_s25, %s619_s26  }
  0x2e   : > { %p455_p0 = scmp.ge.s32.totalorder %s615_s14, 1  ;;  %p132_p2 = scmp.lt.s32.totalorder %s615_s14, 5 }
  0x30   : > { %p133_p7 = pnand %p455_p0, %p132_p2 }
  0x31   : > { %s744_s27 = sand.u32 (!%p133_p7), 1, %s607_s12  }
  0x32   : > { %136 = sbr.rel (%p133_p7) target bundleno = 176 (0xb0), region = 28  ;;  %s456_s28 = sshll.u32 (!%p133_p7), %s744_s27, 9 }
  0x33   : > { %s139_s30 = scalar_lea.sflag (!%p133_p7), [#allocation4], %s744_s27  ;;  %s750_s6 = scalar_lea.vmem (!%p133_p7), [#allocation3], %s456_s28 }
  0x39   : > { %594 = dma.done.wait (%p684_p6), %s139_s30, 8192  }
  0x3a   : > { %596 = vsyncadd (%p684_p6), %s139_s30, 4294959104  ;;  %s165_s29 = sld [smem:[#allocation2]]  ;;  %v169_v2 = vld [vmem:[%s750_s6] sm:$0xff]  ;;  %v170_v3 = vld [vmem:[%s750_s6 + $0x8] sm:$0xff]  ;;  %s804_s3 = scalar_lea.vmem [#allocation6], %s456_s28 }
  0x3b   : > { %v171_v4 = vld [vmem:[%s750_s6 + $0x10] sm:$0xff]  ;;  %v172_v5 = vld [vmem:[%s750_s6 + $0x18] sm:$0xff]  ;;  %v173_v6 = vld [vmem:[%s750_s6 + $0x20] sm:$0xff]  ;;  %s464_s4 = sshll.u32 %s662_s0, 13  ;;  %s376_s5 = sshll.u32 %s804_s3, 4  ;;  %s949_s5 = int_to_ptr.vmem [resolvable:$true] %s376_s5 }
  0x3c   : > { %v174_v7 = vld [vmem:[%s750_s6 + $0x28] sm:$0xff]  ;;  %v175_v8 = vld [vmem:[%s750_s6 + $0x30] sm:$0xff]  ;;  %v176_v9 = vld [vmem:[%s750_s6 + $0x38] sm:$0xff]  ;;  %s945_s9 = scalar_lea.hbm %s1010_s2, %s464_s4  ;;  %s363_s0 = scalar_lea.sflag [#allocation5], %s744_s27 }
  0x3d   : > { %v177_v10 = vld [vmem:[%s750_s6 + $0x40] sm:$0xff]  ;;  %v178_v11 = vld [vmem:[%s750_s6 + $0x48] sm:$0xff]  ;;  %v179_v12 = vld [vmem:[%s750_s6 + $0x50] sm:$0xff]  ;;  %s549_s10 = scalar_lea.vmem %s949_s5, 8192  ;;  %p1017_p10 = scmp.ne.s32.totalorder %s1014_s22, 0 }
  0x3e   : > { %v180_v13 = vld [vmem:[%s750_s6 + $0x58] sm:$0xff]  ;;  %v181_v14 = vld [vmem:[%s750_s6 + $0x60] sm:$0xff]  ;;  %v182_v15 = vld [vmem:[%s750_s6 + $0x68] sm:$0xff]  ;;  %p550_p6 = scmp.ne.s32.totalorder %s949_s5, %s549_s10  ;;  %s620_s15 = smov [#allocation6]  }
  0x3f   : > { %v183_v16 = vld [vmem:[%s750_s6 + $0x70] sm:$0xff]  ;;  %v184_v17 = vld [vmem:[%s750_s6 + $0x78] sm:$0xff]  ;;  %v185_v19 = vld [vmem:[%s750_s6 + $0x80] sm:$0xff]  ;;  %s553_s17 = sshll.u32 %s620_s15, 4  ;;  %s554_s17 = int_to_ptr.vmem [resolvable:$false] %s553_s17 }
  0x40   : > { %v166_v0 = vstv %s165_s29  ;;  %v186_v20 = vld [vmem:[%s750_s6 + $0x88] sm:$0xff]  ;;  %v187_v21 = vld [vmem:[%s750_s6 + $0x90] sm:$0xff]  ;;  %v188_v22 = vld [vmem:[%s750_s6 + $0x98] sm:$0xff]  ;;  %p551_p11 = pnand %p550_p6, %p1017_p10  ;;  %s555_s18 = scalar_lea.vmem %s554_s17, 16384 }
  0x41   : > { %517 = vrcp.f32 %v166_v0  ;;  %v189_v23 = vld [vmem:[%s750_s6 + $0xa0] sm:$0xff]  ;;  %v190_v24 = vld [vmem:[%s750_s6 + $0xa8] sm:$0xff]  ;;  %v191_v25 = vld [vmem:[%s750_s6 + $0xb0] sm:$0xff]  ;;  %p556_p8 = scmp.lt.s32.totalorder %s949_s5, %s554_s17  ;;  %p557_p9 = scmp.lt.s32.totalorder %s555_s18, %s549_s10 }
  0x42   : > { %v192_v26 = vld [vmem:[%s750_s6 + $0xb8] sm:$0xff]  ;;  %v193_v31 = vld [vmem:[%s750_s6 + $0xc0] sm:$0xff]  ;;  %v194_v32 = vld [vmem:[%s750_s6 + $0xc8] sm:$0xff]  ;;  %p552_p12 = pneg %p551_p11 }
  0x43   : > { %v195_v33 = vld [vmem:[%s750_s6 + $0xd0] sm:$0xff]  ;;  %v196_v34 = vld [vmem:[%s750_s6 + $0xd8] sm:$0xff]  ;;  %v197_v39 = vld [vmem:[%s750_s6 + $0xe0] sm:$0xff]  ;;  %p558_p13 = por %p557_p9, %p556_p8 }
  0x44   : > { %v198_v40 = vld [vmem:[%s750_s6 + $0xe8] sm:$0xff]  ;;  %v199_v41 = vld [vmem:[%s750_s6 + $0xf0] sm:$0xff]  ;;  %v200_v42 = vld [vmem:[%s750_s6 + $0xf8] sm:$0xff] }
  0x45   : > { %v201_v47 = vld [vmem:[%s750_s6 + $0x100] sm:$0xff]  ;;  %v202_v48 = vld [vmem:[%s750_s6 + $0x108] sm:$0xff]  ;;  %v203_v49 = vld [vmem:[%s750_s6 + $0x110] sm:$0xff]  ;;  %p559_p1 = pnand %p558_p13, %p552_p12 }
  0x46   : > { %v204_v50 = vld [vmem:[%s750_s6 + $0x118] sm:$0xff]  ;;  %v205_v55 = vld [vmem:[%s750_s6 + $0x120] sm:$0xff]  ;;  %v206_v56 = vld [vmem:[%s750_s6 + $0x128] sm:$0xff] }
  0x47   : > { %v207_v57 = vld [vmem:[%s750_s6 + $0x130] sm:$0xff]  ;;  %v208_v58 = vld [vmem:[%s750_s6 + $0x138] sm:$0xff]  ;;  %v209_v63 = vld [vmem:[%s750_s6 + $0x140] sm:$0xff] }
  0x48   : > { %v210_v0 = vld [vmem:[%s750_s6 + $0x148] sm:$0xff] }
  0x4b   : > { %v518_v1 = vpop.eup %517 }
  0x4c   : > { %465 = vpush %v518_v1  ;;  %v211_v1 = vld [vmem:[%s750_s6 + $0x150] sm:$0xff] }
  0x7d   : > { %s466_s21 = spop %465 }
  0x7e   : > { %v772_v18 = vstv %s466_s21 }
  0x7f   : > { %v234_v27 = vmul.f32 %v772_v18, %v169_v2  ;;  %v235_v28 = vmul.f32 %v772_v18, %v170_v3  ;;  %v236_v29 = vmul.f32 %v772_v18, %v171_v4  ;;  %v237_v30 = vmul.f32 %v772_v18, %v172_v5 }
  0x80   : > { %v238_v35 = vmul.f32 %v772_v18, %v173_v6  ;;  %v239_v36 = vmul.f32 %v772_v18, %v174_v7  ;;  %v240_v37 = vmul.f32 %v772_v18, %v175_v8  ;;  %v241_v38 = vmul.f32 %v772_v18, %v176_v9  ;;  %v212_v6 = vld [vmem:[%s750_s6 + $0x158] sm:$0xff]  ;;  %v213_v7 = vld [vmem:[%s750_s6 + $0x160] sm:$0xff]  ;;  %v214_v8 = vld [vmem:[%s750_s6 + $0x168] sm:$0xff] }
  0x81   : > { %v242_v43 = vmul.f32 %v772_v18, %v177_v10  ;;  %v243_v44 = vmul.f32 %v772_v18, %v178_v11  ;;  %v244_v45 = vmul.f32 %v772_v18, %v179_v12  ;;  %v245_v46 = vmul.f32 %v772_v18, %v180_v13  ;;  %298 = vst [vmem:[%s804_s3] sm:$0xff] %v234_v27  ;;  %v215_v13 = vld [vmem:[%s750_s6 + $0x170] sm:$0xff] }
  0x82   : > { %299 = vst [vmem:[%s804_s3 + $0x8] sm:$0xff] %v235_v28  ;;  %300 = vst [vmem:[%s804_s3 + $0x10] sm:$0xff] %v236_v29  ;;  %v246_v51 = vmul.f32 %v772_v18, %v181_v14  ;;  %v247_v52 = vmul.f32 %v772_v18, %v182_v15  ;;  %v248_v53 = vmul.f32 %v772_v18, %v183_v16  ;;  %v216_v14 = vld [vmem:[%s750_s6 + $0x178] sm:$0xff]  ;;  %v217_v15 = vld [vmem:[%s750_s6 + $0x180] sm:$0xff] }
  0x83   : > { %301 = vst [vmem:[%s804_s3 + $0x18] sm:$0xff] %v237_v30  ;;  %v249_v54 = vmul.f32 %v772_v18, %v184_v17  ;;  %302 = vst [vmem:[%s804_s3 + $0x20] sm:$0xff] %v238_v35  ;;  %v250_v59 = vmul.f32 %v772_v18, %v185_v19  ;;  %v251_v60 = vmul.f32 %v772_v18, %v186_v20  ;;  %v221_v28 = vld [vmem:[%s750_s6 + $0x1a0] sm:$0xff]  ;;  %v222_v29 = vld [vmem:[%s750_s6 + $0x1a8] sm:$0xff] }
  0x84   : > { %303 = vst [vmem:[%s804_s3 + $0x28] sm:$0xff] %v239_v36  ;;  %304 = vst [vmem:[%s804_s3 + $0x30] sm:$0xff] %v240_v37  ;;  %v252_v61 = vmul.f32 %v772_v18, %v187_v21  ;;  %v253_v62 = vmul.f32 %v772_v18, %v188_v22  ;;  %v254_v2 = vmul.f32 %v772_v18, %v189_v23  ;;  %v218_v21 = vld [vmem:[%s750_s6 + $0x188] sm:$0xff]  ;;  %v219_v22 = vld [vmem:[%s750_s6 + $0x190] sm:$0xff] }
  0x85   : > { %305 = vst [vmem:[%s804_s3 + $0x38] sm:$0xff] %v241_v38  ;;  %306 = vst [vmem:[%s804_s3 + $0x40] sm:$0xff] %v242_v43  ;;  %v255_v3 = vmul.f32 %v772_v18, %v190_v24  ;;  %v256_v4 = vmul.f32 %v772_v18, %v191_v25  ;;  %v257_v5 = vmul.f32 %v772_v18, %v192_v26  ;;  %v220_v23 = vld [vmem:[%s750_s6 + $0x198] sm:$0xff]  ;;  %v223_v30 = vld [vmem:[%s750_s6 + $0x1b0] sm:$0xff] }
  0x86   : > { %307 = vst [vmem:[%s804_s3 + $0x48] sm:$0xff] %v243_v44  ;;  %308 = vst [vmem:[%s804_s3 + $0x50] sm:$0xff] %v244_v45  ;;  %v258_v9 = vmul.f32 %v772_v18, %v193_v31  ;;  %v259_v10 = vmul.f32 %v772_v18, %v194_v32  ;;  %v260_v11 = vmul.f32 %v772_v18, %v195_v33  ;;  %v224_v35 = vld [vmem:[%s750_s6 + $0x1b8] sm:$0xff]  ;;  %v225_v36 = vld [vmem:[%s750_s6 + $0x1c0] sm:$0xff] }
  0x87   : > { %309 = vst [vmem:[%s804_s3 + $0x58] sm:$0xff] %v245_v46  ;;  %310 = vst [vmem:[%s804_s3 + $0x60] sm:$0xff] %v246_v51  ;;  %v261_v12 = vmul.f32 %v772_v18, %v196_v34  ;;  %v262_v16 = vmul.f32 %v772_v18, %v197_v39  ;;  %v263_v17 = vmul.f32 %v772_v18, %v198_v40  ;;  %v226_v37 = vld [vmem:[%s750_s6 + $0x1c8] sm:$0xff]  ;;  %v228_v43 = vld [vmem:[%s750_s6 + $0x1d8] sm:$0xff] }
  0x88   : > { %311 = vst [vmem:[%s804_s3 + $0x68] sm:$0xff] %v247_v52  ;;  %312 = vst [vmem:[%s804_s3 + $0x70] sm:$0xff] %v248_v53  ;;  %v264_v19 = vmul.f32 %v772_v18, %v199_v41  ;;  %v265_v20 = vmul.f32 %v772_v18, %v200_v42  ;;  %v266_v24 = vmul.f32 %v772_v18, %v201_v47  ;;  %v227_v42 = vld [vmem:[%s750_s6 + $0x1d0] sm:$0xff]  ;;  %v229_v44 = vld [vmem:[%s750_s6 + $0x1e0] sm:$0xff] }
  0x89   : > { %313 = vst [vmem:[%s804_s3 + $0x78] sm:$0xff] %v249_v54  ;;  %314 = vst [vmem:[%s804_s3 + $0x80] sm:$0xff] %v250_v59  ;;  %v267_v25 = vmul.f32 %v772_v18, %v202_v48  ;;  %v268_v26 = vmul.f32 %v772_v18, %v203_v49  ;;  %v269_v27 = vmul.f32 %v772_v18, %v204_v50  ;;  %v230_v49 = vld [vmem:[%s750_s6 + $0x1e8] sm:$0xff]  ;;  %v231_v50 = vld [vmem:[%s750_s6 + $0x1f0] sm:$0xff] }
  0x8a   : > { %315 = vst [vmem:[%s804_s3 + $0x88] sm:$0xff] %v251_v60  ;;  %316 = vst [vmem:[%s804_s3 + $0x90] sm:$0xff] %v252_v61  ;;  %v270_v31 = vmul.f32 %v772_v18, %v205_v55  ;;  %v271_v32 = vmul.f32 %v772_v18, %v206_v56  ;;  %v272_v33 = vmul.f32 %v772_v18, %v207_v57  ;;  %v232_v51 = vld [vmem:[%s750_s6 + $0x1f8] sm:$0xff] }
  0x8b   : > { %317 = vst [vmem:[%s804_s3 + $0x98] sm:$0xff] %v253_v62  ;;  %318 = vst [vmem:[%s804_s3 + $0xa0] sm:$0xff] %v254_v2  ;;  %v273_v34 = vmul.f32 %v772_v18, %v208_v58  ;;  %v274_v38 = vmul.f32 %v772_v18, %v209_v63  ;;  %v275_v39 = vmul.f32 %v772_v18, %v210_v0 }
  0x8c   : > { %319 = vst [vmem:[%s804_s3 + $0xa8] sm:$0xff] %v255_v3  ;;  %320 = vst [vmem:[%s804_s3 + $0xb0] sm:$0xff] %v256_v4  ;;  %v276_v40 = vmul.f32 %v772_v18, %v211_v1  ;;  %v277_v41 = vmul.f32 %v772_v18, %v212_v6  ;;  %v278_v45 = vmul.f32 %v772_v18, %v213_v7 }
  0x8d   : > { %321 = vst [vmem:[%s804_s3 + $0xb8] sm:$0xff] %v257_v5  ;;  %322 = vst [vmem:[%s804_s3 + $0xc0] sm:$0xff] %v258_v9  ;;  %v279_v46 = vmul.f32 %v772_v18, %v214_v8  ;;  %v280_v47 = vmul.f32 %v772_v18, %v215_v13  ;;  %v281_v48 = vmul.f32 %v772_v18, %v216_v14 }
  0x8e   : > { %323 = vst [vmem:[%s804_s3 + $0xc8] sm:$0xff] %v259_v10  ;;  %324 = vst [vmem:[%s804_s3 + $0xd0] sm:$0xff] %v260_v11  ;;  %v282_v52 = vmul.f32 %v772_v18, %v217_v15  ;;  %v283_v53 = vmul.f32 %v772_v18, %v218_v21  ;;  %v284_v54 = vmul.f32 %v772_v18, %v219_v22 }
  0x8f   : > { %325 = vst [vmem:[%s804_s3 + $0xd8] sm:$0xff] %v261_v12  ;;  %326 = vst [vmem:[%s804_s3 + $0xe0] sm:$0xff] %v262_v16  ;;  %v285_v55 = vmul.f32 %v772_v18, %v220_v23  ;;  %v286_v56 = vmul.f32 %v772_v18, %v221_v28  ;;  %v287_v57 = vmul.f32 %v772_v18, %v222_v29 }
  0x90   : > { %327 = vst [vmem:[%s804_s3 + $0xe8] sm:$0xff] %v263_v17  ;;  %328 = vst [vmem:[%s804_s3 + $0xf0] sm:$0xff] %v264_v19  ;;  %v288_v58 = vmul.f32 %v772_v18, %v223_v30  ;;  %v289_v59 = vmul.f32 %v772_v18, %v224_v35  ;;  %v290_v60 = vmul.f32 %v772_v18, %v225_v36 }
  0x91   : > { %329 = vst [vmem:[%s804_s3 + $0xf8] sm:$0xff] %v265_v20  ;;  %330 = vst [vmem:[%s804_s3 + $0x100] sm:$0xff] %v266_v24  ;;  %v291_v61 = vmul.f32 %v772_v18, %v226_v37  ;;  %v292_v62 = vmul.f32 %v772_v18, %v227_v42  ;;  %v293_v63 = vmul.f32 %v772_v18, %v228_v43 }
  0x92   : > { %331 = vst [vmem:[%s804_s3 + $0x108] sm:$0xff] %v267_v25  ;;  %332 = vst [vmem:[%s804_s3 + $0x110] sm:$0xff] %v268_v26  ;;  %v294_v0 = vmul.f32 %v772_v18, %v229_v44  ;;  %v295_v1 = vmul.f32 %v772_v18, %v230_v49  ;;  %v296_v2 = vmul.f32 %v772_v18, %v231_v50 }
  0x93   : > { %333 = vst [vmem:[%s804_s3 + $0x118] sm:$0xff] %v269_v27  ;;  %334 = vst [vmem:[%s804_s3 + $0x120] sm:$0xff] %v270_v31  ;;  %v297_v3 = vmul.f32 %v772_v18, %v232_v51 }
  0x94   : > { %335 = vst [vmem:[%s804_s3 + $0x128] sm:$0xff] %v271_v32  ;;  %336 = vst [vmem:[%s804_s3 + $0x130] sm:$0xff] %v272_v33 }
  0x95   : > { %337 = vst [vmem:[%s804_s3 + $0x138] sm:$0xff] %v273_v34  ;;  %338 = vst [vmem:[%s804_s3 + $0x140] sm:$0xff] %v274_v38 }
  0x96   : > { %339 = vst [vmem:[%s804_s3 + $0x148] sm:$0xff] %v275_v39  ;;  %340 = vst [vmem:[%s804_s3 + $0x150] sm:$0xff] %v276_v40 }
  0x97   : > { %341 = vst [vmem:[%s804_s3 + $0x158] sm:$0xff] %v277_v41  ;;  %342 = vst [vmem:[%s804_s3 + $0x160] sm:$0xff] %v278_v45 }
  0x98   : > { %343 = vst [vmem:[%s804_s3 + $0x168] sm:$0xff] %v279_v46  ;;  %344 = vst [vmem:[%s804_s3 + $0x170] sm:$0xff] %v280_v47 }
  0x99   : > { %345 = vst [vmem:[%s804_s3 + $0x178] sm:$0xff] %v281_v48  ;;  %346 = vst [vmem:[%s804_s3 + $0x180] sm:$0xff] %v282_v52 }
  0x9a   : > { %347 = vst [vmem:[%s804_s3 + $0x188] sm:$0xff] %v283_v53  ;;  %348 = vst [vmem:[%s804_s3 + $0x190] sm:$0xff] %v284_v54 }
  0x9b   : > { %349 = vst [vmem:[%s804_s3 + $0x198] sm:$0xff] %v285_v55  ;;  %350 = vst [vmem:[%s804_s3 + $0x1a0] sm:$0xff] %v286_v56 }
  0x9c   : > { %351 = vst [vmem:[%s804_s3 + $0x1a8] sm:$0xff] %v287_v57  ;;  %352 = vst [vmem:[%s804_s3 + $0x1b0] sm:$0xff] %v288_v58 }
  0x9d   : > { %353 = vst [vmem:[%s804_s3 + $0x1b8] sm:$0xff] %v289_v59  ;;  %354 = vst [vmem:[%s804_s3 + $0x1c0] sm:$0xff] %v290_v60 }
  0x9e   : > { %355 = vst [vmem:[%s804_s3 + $0x1c8] sm:$0xff] %v291_v61  ;;  %356 = vst [vmem:[%s804_s3 + $0x1d0] sm:$0xff] %v292_v62 }
  0x9f   : > { %357 = vst [vmem:[%s804_s3 + $0x1d8] sm:$0xff] %v293_v63  ;;  %358 = vst [vmem:[%s804_s3 + $0x1e0] sm:$0xff] %v294_v0 }
  0xa0   : > { %359 = vst [vmem:[%s804_s3 + $0x1e8] sm:$0xff] %v295_v1  ;;  %360 = vst [vmem:[%s804_s3 + $0x1f0] sm:$0xff] %v296_v2 }
  0xa1   : > { %361 = vst [vmem:[%s804_s3 + $0x1f8] sm:$0xff] %v297_v3 }
  0xa2   : > { %562 = shalt.err (!%p559_p1)
}
  0xa3   : > { %s563_s20 = scalar_lea.hbm %s945_s9, 8192  ;;  %s567_s26 = scalar_lea.hbm %s1010_s2, 32768 }
  0xa4   : > { %p564_p3 = scmp.ne.s32.totalorder %s945_s9, %s563_s20  ;;  %p568_p0 = scmp.lt.u32.totalorder %s945_s9, %s1010_s2 }
  0xa5   : > { %p569_p2 = scmp.lt.u32.totalorder %s567_s26, %s563_s20  ;;  %p571_p6 = scmp.lt.u32.totalorder %s563_s20, %s945_s9 }
  0xa6   : > { %p565_p4 = pnand %p564_p3, %p1017_p10 }
  0xa7   : > { %p570_p7 = por %p569_p2, %p568_p0 }
  0xa8   : > { %p566_p5 = pneg %p565_p4 }
  0xa9   : > { %p572_p11 = por %p571_p6, %p570_p7 }
  0xab   : > { %p573_p12 = pnand %p572_p11, %p566_p5 }
  0xad   : > { %576 = shalt.err (!%p573_p12)
}
  0xae   : > { %s621_s6 = smov 128   ;;  %s622_s29 = smov 8  }
  0xaf   : > { %469 = dma.vmem_to_hbm [thread:$0]  (%p1017_p10), %s949_s5, 8192, %s945_s9, %s363_s0, %s621_s6, %s621_s6, %s622_s29  }
  0xb0 PF: > { %p480_p8 = scmp.ge.s32.totalorder %s615_s14, 2  ;;  %s391_s21 = sand.u32 1, %s603_s11  }
  0xb1   : > { %p1018_p9 = scmp.ne.s32.totalorder %s1015_s23, 0  ;;  %s392_s3 = scalar_lea.sflag [#allocation5], %s391_s21 }
  0xb3   : > { %p476_p13 = pnand %p480_p8, %p1018_p9 }
  0xb5   : > { %598 = dma.done.wait (!%p476_p13), %s392_s3, 8192  }
  0xb6   : > { %600 = vsyncadd (!%p476_p13), %s392_s3, 4294959104  ;;  %p16_p1 = scmp.ge.s32.totalorder %s666_s16, 6   ;;  %s1019_s11 = smov %s607_s12 }
  0xb7   : > { %s1020_s12 = smov %s611_s13  ;;  %s1021_s13 = smov %s678_s19 }
  0xb8   : > { %s1022_s14 = smov %s666_s16  ;;  %18 = sbr.rel (!%p16_p1) target bundleno = 7 (0x7), region = 73 }
  0xbf   :  { %397 = vsyncpa [#allocation4], 1 }
  0xc0   :  { %399 = vsyncpa [#allocation4 + $0x1], 1 }
  0xc1   :  { %400 = vsyncpa [#allocation5], 1 }
  0xc2   :  { %402 = vsyncpa [#allocation5 + $0x1], 1 }

</bundles_post_ra>
